<compile_context>
chip_gen: v7x
topology: tpu7x:2x2x1
jax: 0.10.0
libtpu: 0.0.40
codegen_flags: <defaults>
</compile_context>

<pallas_src>
import math

import jax
import jax.numpy as jnp
from jax.experimental import pallas as pl
from jax.experimental.pallas import tpu as pltpu


def _round_up(x, m):
    return (x + m - 1) // m * m


def _head_conv_kernel(x_ref, w_ref, b_ref, o_ref):
    # x_ref: (1, C, TM)   input feature columns (spatial on lanes)
    # w_ref: (O, C)       1x1 conv weight, O = num_anchors * (num_classes + 5)
    # b_ref: (O, 1)       conv bias, pre-cast to f32 in the wrapper
    # o_ref: (1, O, TM)   prediction logits (spatial on lanes -> lane-dense store)
    x = x_ref[0]
    y = jnp.dot(w_ref[...], x, preferred_element_type=jnp.float32)
    y = y + b_ref[...]
    o_ref[0] = y.astype(o_ref.dtype)


def _pick_tile(HW, N, C, O, itemsize, max_tile_lanes, vmem_tile_budget_bytes):
    """Pick a lane-tile size TM and grid_m for the spatial axis."""
    # Keep double-buffered (input + output) tiles under the VMEM budget.
    budget_lanes = vmem_tile_budget_bytes // (2 * (C + O) * itemsize)
    tile_cap = max(128, min(max_tile_lanes, (budget_lanes // 128) * 128))

    if HW <= tile_cap:
        TM, grid_m = HW, 1                      # whole image in one tile
    else:
        grid_m0 = pl.cdiv(HW, tile_cap)
        TM = _round_up(pl.cdiv(HW, grid_m0), 128)   # balanced tiles, mult. of 128
        grid_m = pl.cdiv(HW, TM)

    # v7x megacore: make sure there are >= 2 parallel grid steps when feasible
    # so both TensorCores get work even at N == 1.
    if N * grid_m < 2 and HW >= 256:
        TM = _round_up(pl.cdiv(HW, 2), 128)
        grid_m = pl.cdiv(HW, TM)
    return TM, grid_m


def _head_level(x, weight, bias, num_anchors, *,
                max_tile_lanes=8192,
                vmem_tile_budget_bytes=24 * 1024 * 1024):
    """One pyramid level: 1x1 conv + view/permute to (N, A, H, W, K)."""
    N, C, H, W = x.shape
    O = weight.shape[0]
    K = O // num_anchors
    HW = H * W

    itemsize = jnp.dtype(x.dtype).itemsize
    TM, grid_m = _pick_tile(HW, N, C, O, itemsize,
                            max_tile_lanes, vmem_tile_budget_bytes)

    xm = x.reshape(N, C, HW)                    # no padding: last block is masked
    b_col = bias.reshape(O, 1).astype(jnp.float32)

    out = pl.pallas_call(
        _head_conv_kernel,
        out_shape=jax.ShapeDtypeStruct((N, O, HW), x.dtype),
        grid_spec=pltpu.PrefetchScalarGridSpec(
            num_scalar_prefetch=0,
            grid=(N, grid_m),
            in_specs=[
                pl.BlockSpec((1, C, TM), lambda n, m: (n, 0, m)),
                # weight/bias index maps are constant -> fetched once, kept resident.
                pl.BlockSpec((O, C), lambda n, m: (0, 0)),
                pl.BlockSpec((O, 1), lambda n, m: (0, 0)),
            ],
            out_specs=pl.BlockSpec((1, O, TM), lambda n, m: (n, 0, m)),
        ),
        compiler_params=pltpu.CompilerParams(
            dimension_semantics=("parallel", "parallel"),
            vmem_limit_bytes=48 * 1024 * 1024,
        ),
    )(xm, weight, b_col)

    # Layout-only epilogue (spec requires (N, A, H, W, K)); left to XLA because
    # writing K on lanes from the kernel would be lane-sparse.
    out = out.reshape(N, num_anchors, K, H, W)    # .view(N, A, K, H, W)
    return jnp.transpose(out, (0, 1, 3, 4, 2))    # .permute(0, 1, 3, 4, 2)


def yolo_head_forward(features, weights, biases, num_anchors, *,
                      max_tile_lanes=8192,
                      vmem_tile_budget_bytes=24 * 1024 * 1024):
    """YOLOHead.forward: returns list of per-level (N, A, H, W, K) logits."""
    # TODO(synk): the three levels could be fused into one pallas_call with
    # scalar-prefetched per-level offsets to save two launches; kept per-level
    # for clarity since each level already runs at the HBM roofline.
    return [
        _head_level(x, w, b, num_anchors,
                    max_tile_lanes=max_tile_lanes,
                    vmem_tile_budget_bytes=vmem_tile_budget_bytes)
        for x, w, b in zip(features, weights, biases)
    ]


def _reference_forward(features, weights, biases, num_anchors):
    """Pure-JAX reference mirroring the PyTorch YOLOHead.forward."""
    outs = []
    for x, w, b in zip(features, weights, biases):
        N, C, H, W = x.shape
        O = w.shape[0]
        y = jnp.einsum("oc,nchw->nohw", w, x, precision="highest")
        y = y + b[None, :, None, None]
        y = y.reshape(N, num_anchors, O // num_anchors, H, W)
        outs.append(jnp.transpose(y, (0, 1, 3, 4, 2)))
    return outs


if __name__ == "__main__":
    key = jax.random.PRNGKey(0)
    N = 2
    num_anchors = 3
    num_classes = 3
    num_outputs = num_classes + 5            # K = 8
    O = num_anchors * num_outputs            # 24 conv output channels
    strides = [8, 16, 32]
    in_channels = [16, 32, 64]
    spatials = [(20, 20), (8, 8), (4, 4)]    # level 0: HW=400, not a multiple of 128

    features, weights, biases = [], [], []
    for ch, (H, W), s in zip(in_channels, spatials, strides):
        key, kx, kw = jax.random.split(key, 3)
        features.append(jax.random.normal(kx, (N, ch, H, W), dtype=jnp.float32))
        weights.append(jax.random.normal(kw, (O, ch), dtype=jnp.float32) * 0.02)
        # Bias prior from YOLOHead.__init__ (objectness / class priors).
        b = jnp.zeros((num_anchors, num_outputs), dtype=jnp.float32)
        b = b.at[:, 4].add(math.log(8.0 / (640.0 / s) ** 2))
        b = b.at[:, 5:].add(math.log(0.6 / (num_classes - 0.999999)))
        biases.append(b.reshape(-1))

    refs = _reference_forward(features, weights, biases, num_anchors)

    # 1) Default tiling: whole-image tiles (no padding, unmasked DMAs).
    outs = yolo_head_forward(features, weights, biases, num_anchors)
    jax.block_until_ready(outs)
    for o, r in zip(outs, refs):
        assert o.shape == r.shape, (o.shape, r.shape)
        assert jnp.allclose(o, r, atol=2e-3, rtol=2e-3), (
            float(jnp.max(jnp.abs(o - r))))

    # 2) Force a ragged final tile on level 0 (HW=400, TM=256 -> 2 tiles,
    #    masked partial read/store on the last block).
    outs_ragged = yolo_head_forward(features, weights, biases, num_anchors,
                                    max_tile_lanes=256)
    jax.block_until_ready(outs_ragged)
    for o, r in zip(outs_ragged, refs):
        assert o.shape == r.shape, (o.shape, r.shape)
        assert jnp.allclose(o, r, atol=2e-3, rtol=2e-3), (
            float(jnp.max(jnp.abs(o - r))))

    # 3) bf16 path (inputs already bf16 upstream -> half the HBM traffic).
    f16 = [f.astype(jnp.bfloat16) for f in features]
    w16 = [w.astype(jnp.bfloat16) for w in weights]
    outs_bf16 = yolo_head_forward(f16, w16, biases, num_anchors)
    jax.block_until_ready(outs_bf16)
    refs_bf16 = _reference_forward([f.astype(jnp.float32) for f in f16],
                                   [w.astype(jnp.float32) for w in w16],
                                   biases, num_anchors)
    for o, r in zip(outs_bf16, refs_bf16):
        assert o.dtype == jnp.bfloat16
        assert jnp.allclose(o.astype(jnp.float32), r, atol=5e-2, rtol=5e-2), (
            float(jnp.max(jnp.abs(o.astype(jnp.float32) - r))))

    # TODO(synk): nothing in YOLOHead.forward is data-dependent; score decode /
    # NMS live in PostProcess, outside this module's forward.
    print("KERNEL_OK")
</pallas_src>

<mosaic_0001>
module attributes {stable_mosaic.version = 11 : i64} {
  func.func @_head_conv_kernel(%arg0: i32, %arg1: i32, %arg2: memref<1x16x400xf32, #tpu.memory_space<vmem>>, %arg3: memref<24x16xf32, #tpu.memory_space<vmem>>, %arg4: memref<24x1xf32, #tpu.memory_space<vmem>>, %arg5: memref<1x24x400xf32, #tpu.memory_space<vmem>>) attributes {dimension_semantics = [#tpu.dimension_semantics<parallel>, #tpu.dimension_semantics<parallel>], iteration_bounds = array<i64: 2, 1>, scalar_prefetch = 0 : i64, scratch_operands = 0 : i64, tpu.core_type = #tpu.core_type<tc>, window_params = [{transform_indices = @transform_0, window_bounds = array<i64: 1, 16, 400>}, {pipeline_mode = #tpu.pipeline_mode<synchronous>, transform_indices = @transform_1, window_bounds = array<i64: 24, 16>}, {pipeline_mode = #tpu.pipeline_mode<synchronous>, transform_indices = @transform_2, window_bounds = array<i64: 24, 1>}, {transform_indices = @transform_3, window_bounds = array<i64: 1, 24, 400>}]} {
    %c0 = arith.constant 0 : index
    %c0_0 = arith.constant 0 : index
    %c0_1 = arith.constant 0 : index
    %0 = vector.load %arg2[%c0, %c0_0, %c0_1] : memref<1x16x400xf32, #tpu.memory_space<vmem>>, vector<1x16x400xf32>
    %1 = vector.shape_cast %0 : vector<1x16x400xf32> to vector<16x400xf32>
    %c0_2 = arith.constant 0 : index
    %c0_3 = arith.constant 0 : index
    %2 = vector.load %arg3[%c0_2, %c0_3] : memref<24x16xf32, #tpu.memory_space<vmem>>, vector<24x16xf32>
    %cst = arith.constant dense<0.000000e+00> : vector<24x400xf32>
    %3 = tpu.matmul %2, %1, %cst {dimension_numbers = #tpu.dot_dimension_numbers<[1], [0], [0], [1], [0, 0, 1, 1], [], []>} : vector<24x16xf32>, vector<16x400xf32>, vector<24x400xf32> -> vector<24x400xf32>
    %c0_4 = arith.constant 0 : index
    %c0_5 = arith.constant 0 : index
    %4 = vector.load %arg4[%c0_4, %c0_5] : memref<24x1xf32, #tpu.memory_space<vmem>>, vector<24x1xf32>
    %5 = vector.broadcast %4 : vector<24x1xf32> to vector<24x400xf32>
    %6 = arith.addf %3, %5 : vector<24x400xf32>
    %c0_6 = arith.constant 0 : index
    %c0_7 = arith.constant 0 : index
    %c0_8 = arith.constant 0 : index
    %7 = vector.load %arg5[%c0_6, %c0_7, %c0_8] : memref<1x24x400xf32, #tpu.memory_space<vmem>>, vector<1x24x400xf32>
    %8 = vector.shape_cast %7 : vector<1x24x400xf32> to vector<24x400xf32>
    %9 = vector.shape_cast %6 : vector<24x400xf32> to vector<1x24x400xf32>
    tpu.vector_store %arg5[%c0_6, %c0_7, %c0_8], %9 {strides = array<i32>} : memref<1x24x400xf32, #tpu.memory_space<vmem>>, vector<1x24x400xf32>,
    return
  }
  func.func @transform_0(%arg0: i32, %arg1: i32) -> (i32, i32, i32) {
    %c0_i32 = arith.constant 0 : i32
    %c0_i32_0 = arith.constant 0 : i32
    return %arg0, %c0_i32, %arg1 : i32, i32, i32
  }
  func.func @transform_1(%arg0: i32, %arg1: i32) -> (i32, i32) {
    %c0_i32 = arith.constant 0 : i32
    %c0_i32_0 = arith.constant 0 : i32
    %c0_i32_1 = arith.constant 0 : i32
    return %c0_i32, %c0_i32_0 : i32, i32
  }
  func.func @transform_2(%arg0: i32, %arg1: i32) -> (i32, i32) {
    %c0_i32 = arith.constant 0 : i32
    %c0_i32_0 = arith.constant 0 : i32
    %c0_i32_1 = arith.constant 0 : i32
    return %c0_i32, %c0_i32_0 : i32, i32
  }
  func.func @transform_3(%arg0: i32, %arg1: i32) -> (i32, i32, i32) {
    %c0_i32 = arith.constant 0 : i32
    %c0_i32_0 = arith.constant 0 : i32
    return %arg0, %c0_i32, %arg1 : i32, i32, i32
  }
}

</mosaic_0001>

<bundles_post_ra>
// kernel: tpu_custom_call.1
= control target key start
LH: loop header
LB: loop body
LE: loop exit
PB: predicated region body
PF: predicated region fallthrough
CT: control target
= control target key end

     0   :  { %8 = vsyncpa [#allocation3], 0  ;;  %s988_s0 = inlined_call_operand.hbm [shape: f32[2,16,400], index: 0, kind: input, shape index: {}]   ;;  %s989_s1 = inlined_call_operand.vmem [shape: f32[24,16], index: 1, kind: input, shape index: {}]   ;;  %s990_s2 = inlined_call_operand.vmem [shape: f32[24,1], index: 2, kind: input, shape index: {}]   ;;  %s991_s3 = inlined_call_operand.hbm [shape: f32[2,24,400], index: 3, kind: output, shape index: {}]  }
   0x1   :  { %10 = vsyncpa [#allocation3 + $0x1], 0 }
   0x2   :  { %11 = vsyncpa [#allocation4], 0 }
   0x3   :  { %13 = vsyncpa [#allocation4 + $0x1], 0  ;;  %s770_s12 = smov 0   ;;  %s772_s13 = smov 0  }
   0x4   :  { %s774_s14 = smov 0   ;;  %s776_s15 = smov 0  }
   0x5   :  { %s778_s16 = smov 0   ;;  %s780_s17 = smov 0  }
   0x6 LB: > { %s529_s18 = sadd.s32 4294967295, %s740_s17   ;;  %s530_s19 = sadd.s32 4294967294, %s740_s17   ;;  %s740_s17 = sphi %s780_s17, %s19_s17   ;;  %s736_s16 = sphi %s778_s16, %s1006_s16   ;;  %s732_s15 = sphi %s776_s15, %s1005_s15   ;;  %s728_s14 = sphi %s774_s14, %s1004_s14   ;;  %s724_s13 = sphi %s772_s13, %s1003_s13   ;;  %s720_s12 = sphi %s770_s12, %s1002_s12  }
   0x7   : > { %s31_s20 = sadd.s32 1, %s736_s16  ;;  %s40_s21 = sadd.s32 1, %s728_s14 }
   0x8   : > { %p33_p0 = scmp.ge.s32.totalorder %s31_s20, 2  ;;  %p47_p1 = scmp.ne.s32.totalorder %s728_s14, %s724_s13 }
   0x9   : > { %p48_p2 = scmp.eq.s32.totalorder %s740_s17, 0  ;;  %p53_p3 = scmp.ne.s32.totalorder %s724_s13, %s720_s12 }
   0xa   : > { %s1008_s20 = smov (%p33_p0, %s31_s20), 0  ;;  %p54_p5 = scmp.eq.s32.totalorder %s529_s18, 0 }
   0xb   : > { %p811_p4 = por %p48_p2, %p47_p1  ;;  %s35_s23 = ssub.s32 %s736_s16, %s1008_s20 }
   0xc   : > { %p121_p6 = scmp.eq.s32.totalorder %s529_s18, 1  ;;  %p38_p7 = scmp.eq.s32.totalorder %s35_s23, 0 }
   0xd   : > { %p817_p8 = por %p54_p5, %p53_p3  ;;  %p127_p10 = scmp.eq.s32.totalorder %s530_s19, 1 }
   0xe   : > { %p821_p9 = por %p121_p6, %p47_p1  ;;  %p570_p13 = scmp.lt.s32.totalorder %s740_s17, 2 }
   0xf   : > { %s826_s26 = scalar_select %p38_p7, %s728_s14, %s40_s21  }
  0x10   : > { %s995_s25 = scalar_select %p821_p9, 1, 0 }
  0x11   : > { %p828_p11 = por %p127_p10, %p53_p3  ;;  %s153_s28 = sand.u32 1, %s728_s14  }
  0x12   : > { %s533_s29 = sshll.u32 %s153_s28, 6  ;;  %s547_s30 = sshll.u32 %s736_s16, 10 }
  0x13   : > { %s996_s27 = scalar_select %p828_p11, 1, 0 }
  0x14   : > { %s839_s6 = scalar_lea.hbm %s988_s0, %s547_s30  ;;  %s157_s7 = scalar_lea.vmem [#allocation2], %s533_s29 }
  0x15   : > { %s166_s8 = sshll.u32 %s157_s7, 4  ;;  %p845_p0 = pnand %p570_p13, %p811_p4  ;;  %s841_s8 = int_to_ptr.vmem [resolvable:$true] %s166_s8 }
  0x16   : > { %s850_s10 = scalar_lea.sflag [#allocation3], %s153_s28  ;;  %s628_s11 = scalar_lea.hbm %s839_s6, 1024 }
  0x17   : > { %p629_p2 = scmp.ne.s32.totalorder %s839_s6, %s628_s11  ;;  %p630_p3 = pneg %p845_p0 }
  0x18   : > { %s633_s21 = scalar_lea.hbm %s988_s0, 2048  ;;  %p634_p4 = scmp.lt.u32.totalorder %s839_s6, %s988_s0 }
  0x19   : > { %p631_p5 = pnand %p630_p3, %p629_p2  ;;  %p635_p7 = scmp.lt.u32.totalorder %s633_s21, %s628_s11 }
  0x1a   : > { %p637_p13 = scmp.lt.u32.totalorder %s628_s11, %s839_s6 }
  0x1b   : > { %p632_p6 = pneg %p631_p5  ;;  %p636_p10 = por %p635_p7, %p634_p4 }
  0x1d   : > { %p638_p12 = por %p637_p13, %p636_p10 }
  0x1f   : > { %p639_p1 = pnand %p638_p12, %p632_p6 }
  0x21   : > { %642 = shalt.err (!%p639_p1)
}
  0x22   : > { %s643_s28 = scalar_lea.vmem %s841_s8, 1024  ;;  %s742_s29 = smov [#allocation2]  }
  0x23   : > { %p644_p2 = scmp.ne.s32.totalorder %s841_s8, %s643_s28  ;;  %s648_s30 = sshll.u32 %s742_s29, 4  ;;  %s649_s30 = int_to_ptr.vmem [resolvable:$false] %s648_s30 }
  0x24   : > { %s650_s4 = scalar_lea.vmem %s649_s30, 2048  ;;  %p651_p9 = scmp.lt.s32.totalorder %s841_s8, %s649_s30 }
  0x25   : > { %p646_p5 = pnand %p644_p2, %p630_p3  ;;  %p652_p4 = scmp.lt.s32.totalorder %s650_s4, %s643_s28 }
  0x27   : > { %p647_p11 = pneg %p646_p5  ;;  %p653_p7 = por %p652_p4, %p651_p9 }
  0x29   : > { %p654_p10 = pnand %p653_p7, %p647_p11 }
  0x2b   : > { %657 = shalt.err (!%p654_p10)
}
  0x2c   : > { %s743_s5 = smov 512   ;;  %s744_s7 = smov 32  }
  0x2d   : > { %565 = dma.hbm_to_vmem [thread:$0]  (!%p845_p0), %s839_s6, 1024, %s841_s8, %s850_s10, %s743_s5, %s743_s5, %s744_s7  }
  0x2e   : > { %p174_p12 = scmp.lt.s32.totalorder %s740_s17, 3  ;;  %p998_p1 = scmp.ge.s32.totalorder %s740_s17, 1 }
  0x30   : > { %p175_p3 = pnand %p998_p1, %p174_p12 }
  0x31   : > { %s882_s11 = sand.u32 (!%p175_p3), 1, %s724_s13  }
  0x32   : > { %178 = sbr.rel (%p175_p3) target bundleno = 305 (0x131), region = 32  ;;  %s537_s18 = sshll.u32 (!%p175_p3), %s882_s11, 6 }
  0x33   : > { %s181_s19 = scalar_lea.sflag (!%p175_p3), [#allocation3], %s882_s11  ;;  %s184_s21 = scalar_lea.vmem (!%p175_p3), [#allocation2], %s537_s18 }
  0x39   : > { %711 = dma.done.wait (%p817_p8), %s181_s19, 1024  }
  0x3a   : > { %713 = vsyncadd (%p817_p8), %s181_s19, 4294966272  ;;  %v745_v0 = vmov 0.0   ;;  %v746_v1 = vmov 0   ;;  %v210_v2 = vld [vmem:[%s184_s21 + $0x8] sm:$0xff]  ;;  %v212_v4 = vld [vmem:[%s184_s21 + $0x18] sm:$0xff]  ;;  %vm238_vm0 = vcmask 130048  }
  0x3b   : > { %312 = vmatprep.mubr.f32.mxu0 %v745_v0  ;;  %395 = vmatprep.mubr.f32.mxu1 %v745_v0  ;;  %v214_v3 = vld [vmem:[%s184_s21 + $0x28] sm:$0xff]  ;;  %v216_v6 = vld [vmem:[%s184_s21 + $0x38] sm:$0xff]  ;;  %v209_v7 = vld [vmem:[%s184_s21] sm:$0xff]  ;;  %s556_s7 = smul.u32 96, %s882_s11  ;;  %s427_s8 = scalar_lea.sflag [#allocation4], %s882_s11 }
  0x3c   : > { %626 = vset.pattern.permute.xlu0 %v746_v1  ;;  %627 = vset.pattern.permute.xlu1 %v746_v1  ;;  %v548_v5 = vpack.c.bf16 %v214_v3, %v210_v2  ;;  %v213_v8 = vld [vmem:[%s184_s21 + $0x20] sm:$0xff]  ;;  %v552_v9 = vpack.c.bf16 %v216_v6, %v212_v4  ;;  %v211_v11 = vld [vmem:[%s184_s21 + $0x10] sm:$0xff]  ;;  %v221_v17 = vld [vmem:[%s990_s2 + $0x8] sm:$0xff]  ;;  %s557_s19 = smul.u32 1536, %s732_s15  ;;  %p999_p9 = scmp.ne.s32.totalorder %s995_s25, 0 }
  0x3d   : > { %v550_v10 = vpack.c.bf16 %v213_v8, %v209_v7  ;;  %v215_v12 = vld [vmem:[%s184_s21 + $0x30] sm:$0xff]  ;;  %v220_v14 = vld [vmem:[%s990_s2] sm:$0xff]  ;;  %v218_v18 = vld [vmem:[%s989_s1 + $0x8] sm:$0xff]  ;;  %s915_s18 = scalar_lea.vmem [#allocation5], %s556_s7  ;;  %s747_s10 = smov [#allocation5]  }
  0x3e   : > { %549 = vmatprep.subr.bf16.mxu0 %v548_v5  ;;  %v554_v13 = vpack.c.bf16 %v215_v12, %v211_v11  ;;  %553 = vmatprep.subr.bf16.mxu1 %v552_v9  ;;  %v217_v15 = vld [vmem:[%s989_s1] sm:$0xff]  ;;  %v222_v16 = vld [vmem:[%s990_s2 + $0x10] sm:$0xff]  ;;  %s442_s21 = sshll.u32 %s915_s18, 4  ;;  %s932_s6 = scalar_lea.hbm %s991_s3, %s557_s19  ;;  %s934_s21 = int_to_ptr.vmem [resolvable:$true] %s442_s21 }
  0x3f   : > { %551 = vmatpush1.bf16.msra.mxu0 %v550_v10  ;;  %225 = vperm.xlu0 %626, %v220_v14   ;;  %v219_v19 = vld [vmem:[%s989_s1 + $0x10] sm:$0xff]  ;;  %s658_s9 = scalar_lea.vmem %s934_s21, 1536  ;;  %s662_s22 = sshll.u32 %s747_s10, 4  ;;  %s663_s22 = int_to_ptr.vmem [resolvable:$false] %s662_s22 }
  0x40   : > { %555 = vmatpush1.bf16.msra.mxu1 %v554_v13  ;;  %235 = vperm.xlu1 %627, %v222_v16   ;;  %p659_p8 = scmp.ne.s32.totalorder %s934_s21, %s658_s9  ;;  %s664_s23 = scalar_lea.vmem %s663_s22, 3072 }
  0x41   : > { %p665_p6 = scmp.lt.s32.totalorder %s934_s21, %s663_s22  ;;  %p666_p13 = scmp.lt.s32.totalorder %s664_s23, %s658_s9 }
  0x42   : > { %538 = vmatmul.mubr.msk.f32.vlgmr.msra.gmra.mrb[0].mxu0 %vm238_vm0, %v217_v15  ;;  %p660_p11 = pnand %p659_p8, %p999_p9 }
  0x43   : > { %541 = vmatmul.mubr.msk.f32.vlgmr.msra.gmra.mrb[0].mxu1 %vm238_vm0, %v217_v15  ;;  %318 = vmatprep.mubr.f32.mxu0 %v745_v0  ;;  %p667_p2 = por %p666_p13, %p665_p6 }
  0x44   : > { %401 = vmatprep.mubr.f32.mxu1 %v745_v0  ;;  %230 = vperm.xlu0 %626, %v221_v17   ;;  %p661_p0 = pneg %p660_p11 }
  0x46   : > { %539 = vmatmul.mubr.msk.f32.gmra.mrb[2].mxu0 %vm238_vm0, %v218_v18  ;;  %p668_p5 = pnand %p667_p2, %p661_p0 }
  0x47   : > { %542 = vmatmul.mubr.msk.f32.gmra.mrb[2].mxu1 %vm238_vm0, %v218_v18  ;;  %324 = vmatprep.mubr.f32.mxu0 %v745_v0 }
  0x48   : > { %407 = vmatprep.mubr.f32.mxu1 %v745_v0 }
  0x4a   : > { %540 = vmatmul.mubr.msk.f32.gmra.mrb[4].mxu0 %vm238_vm0, %v219_v19 }
  0x4b   : > { %543 = vmatmul.mubr.msk.f32.gmra.mrb[4].mxu1 %vm238_vm0, %v219_v19 }
  0xbe   : > { %v226_v20 = vpop.permute.xlu0 %225 }
  0xbf   : > { %v236_v37 = vpop.permute.xlu1 %235 }
  0xc3   : > { %v231_v28 = vpop.permute.xlu0 %230 }
 0x115   : > { %v314_v21 = vpop.f32.mrb[0].mxu0 }
 0x116   : > { %v315_v22 = vadd.f32 %v314_v21, %v226_v20  ;;  %v397_v23 = vpop.f32.mrb[0].mxu1  ;;  %v316_v24 = vpop.f32.mrb[1].mxu0 }
 0x117   : > { %v398_v25 = vadd.f32 %v397_v23, %v226_v20  ;;  %v317_v26 = vadd.f32 %v316_v24, %v226_v20  ;;  %v399_v27 = vpop.f32.mrb[1].mxu1 }
 0x118   : > { %414 = vst [vmem:[%s915_s18] sm:$0xff] %v315_v22  ;;  %v400_v29 = vadd.f32 %v399_v27, %v226_v20 }
 0x119   : > { %416 = vst [vmem:[%s915_s18 + $0x10] sm:$0xff] %v398_v25  ;;  %415 = vst [vmem:[%s915_s18 + $0x8] sm:$0xff] %v317_v26  ;;  %v320_v30 = vpop.f32.mrb[2].mxu0 }
 0x11a   : > { %417 = vst.msk [vmem:[%s915_s18 + $0x18] sm:$0xff] %vm238_vm0, %v400_v29  ;;  %v321_v31 = vadd.f32 %v320_v30, %v231_v28  ;;  %v403_v32 = vpop.f32.mrb[2].mxu1  ;;  %v322_v33 = vpop.f32.mrb[3].mxu0 }
 0x11b   : > { %v404_v34 = vadd.f32 %v403_v32, %v231_v28  ;;  %v323_v35 = vadd.f32 %v322_v33, %v231_v28  ;;  %v405_v36 = vpop.f32.mrb[3].mxu1 }
 0x11c   : > { %418 = vst [vmem:[%s915_s18 + $0x20] sm:$0xff] %v321_v31  ;;  %v406_v38 = vadd.f32 %v405_v36, %v231_v28 }
 0x11d   : > { %420 = vst [vmem:[%s915_s18 + $0x30] sm:$0xff] %v404_v34  ;;  %419 = vst [vmem:[%s915_s18 + $0x28] sm:$0xff] %v323_v35  ;;  %v326_v39 = vpop.f32.mrb[4].mxu0 }
 0x11e   : > { %421 = vst.msk [vmem:[%s915_s18 + $0x38] sm:$0xff] %vm238_vm0, %v406_v38  ;;  %v327_v40 = vadd.f32 %v326_v39, %v236_v37  ;;  %v409_v41 = vpop.f32.mrb[4].mxu1  ;;  %v328_v42 = vpop.f32.mrb[5].mxu0 }
 0x11f   : > { %v410_v43 = vadd.f32 %v409_v41, %v236_v37  ;;  %v329_v44 = vadd.f32 %v328_v42, %v236_v37  ;;  %v411_v45 = vpop.f32.mrb[5].mxu1 }
 0x120   : > { %422 = vst [vmem:[%s915_s18 + $0x40] sm:$0xff] %v327_v40  ;;  %v412_v46 = vadd.f32 %v411_v45, %v236_v37 }
 0x121   : > { %424 = vst [vmem:[%s915_s18 + $0x50] sm:$0xff] %v410_v43  ;;  %423 = vst [vmem:[%s915_s18 + $0x48] sm:$0xff] %v329_v44 }
 0x122   : > { %425 = vst.msk [vmem:[%s915_s18 + $0x58] sm:$0xff] %vm238_vm0, %v412_v46 }
 0x123   : > { %671 = shalt.err (!%p668_p5)
}
 0x124   : > { %s672_s28 = scalar_lea.hbm %s932_s6, 1536  ;;  %s676_s4 = scalar_lea.hbm %s991_s3, 3072 }
 0x125   : > { %p673_p4 = scmp.ne.s32.totalorder %s932_s6, %s672_s28  ;;  %p677_p12 = scmp.lt.u32.totalorder %s932_s6, %s991_s3 }
 0x126   : > { %p678_p1 = scmp.lt.u32.totalorder %s676_s4, %s672_s28  ;;  %p680_p8 = scmp.lt.u32.totalorder %s672_s28, %s932_s6 }
 0x127   : > { %p674_p7 = pnand %p673_p4, %p999_p9 }
 0x128   : > { %p679_p3 = por %p678_p1, %p677_p12 }
 0x129   : > { %p675_p10 = pneg %p674_p7 }
 0x12a   : > { %p681_p11 = por %p680_p8, %p679_p3 }
 0x12c   : > { %p682_p0 = pnand %p681_p11, %p675_p10 }
 0x12e   : > { %685 = shalt.err (!%p682_p0)
}
 0x12f   : > { %s748_s18 = smov 512   ;;  %s749_s19 = smov 32  }
 0x130   : > { %560 = dma.vmem_to_hbm [thread:$0]  (%p999_p9), %s934_s21, 1536, %s932_s6, %s427_s8, %s748_s18, %s748_s18, %s749_s19  }
 0x131 PF: > { %s457_s15 = sand.u32 1, %s720_s12   ;;  %p1000_p6 = scmp.ne.s32.totalorder %s996_s27, 0 }
 0x132   : > { %p1001_p13 = scmp.ge.s32.totalorder %s740_s17, 2  ;;  %s458_s24 = scalar_lea.sflag [#allocation4], %s457_s15 }
 0x134   : > { %p567_p2 = pnand %p1001_p13, %p1000_p6 }
 0x136   : > { %715 = dma.done.wait (!%p567_p2), %s458_s24, 1536  }
 0x137   : > { %717 = vsyncadd (!%p567_p2), %s458_s24, 4294965760  ;;  %s19_s17 = sadd.s32 1, %s740_s17   ;;  %s1002_s12 = smov %s724_s13 }
 0x138   : > { %p16_p5 = scmp.ge.s32.totalorder %s19_s17, 4   ;;  %s1003_s13 = smov %s728_s14 }
 0x139   : > { %s1004_s14 = smov %s826_s26  ;;  %s1005_s15 = smov %s736_s16 }
 0x13a   : > { %s1006_s16 = smov %s1008_s20  ;;  %18 = sbr.rel (!%p16_p5) target bundleno = 6 (0x6), region = 77 }
 0x141   :  { %463 = vsyncpa [#allocation3], 1 }
 0x142   :  { %465 = vsyncpa [#allocation3 + $0x1], 1 }
 0x143   :  { %466 = vsyncpa [#allocation4], 1 }
 0x144   :  { %468 = vsyncpa [#allocation4 + $0x1], 1 }

</bundles_post_ra>
